<compile_context>
chip_gen: v7x
topology: tpu7x:2x2x1
jax: 0.10.0
libtpu: 0.0.40
codegen_flags: <defaults>
</compile_context>

<pallas_src>
import functools

import jax
import jax.numpy as jnp
from jax.experimental import pallas as pl
from jax.experimental.pallas import tpu as pltpu

LANE = 128            # TPU lane width: internal feature dims padded to this
HIDDEN1 = 128
HIDDEN2 = 64
DEFAULT_BLOCK_B = 2048   # max batch tile (rows per grid step)
MIN_GRID_STEPS = 4       # keep >= 4 grid steps so both v7x TCs + pipeline engage


def _round_up(n, m):
    return ((n + m - 1) // m) * m


def _pad_to(a, shape):
    """Zero-pad array `a` up to `shape` (trailing pads only)."""
    pads = [(0, t - s) for s, t in zip(a.shape, shape)]
    return jnp.pad(a, pads)


def _choose_tile(batch, block_b, min_steps=MIN_GRID_STEPS):
    """Pick a batch tile (multiple of 8, <= block_b) giving >= min_steps grid
    steps for non-tiny batches, preferring exact division of the batch."""
    b8 = _round_up(max(batch, 1), 8)
    if b8 <= 8:
        return 8
    steps = max(min_steps, pl.cdiv(b8, block_b))
    tb = min(block_b, _round_up(pl.cdiv(b8, steps), 8))
    return max(tb, 8)


def qnet_kernel(x_ref, w1_ref, b1_ref, w2_ref, b2_ref, w3_ref, b3_ref, o_ref):
    cdt = w1_ref.dtype  # compute dtype for MXU operands (f32 or bf16)
    # Layer 1: Linear + ReLU (MXU matmul, f32 accumulation; bias/ReLU on VPU).
    x = x_ref[...].astype(cdt)
    h1 = jnp.dot(x, w1_ref[...], preferred_element_type=jnp.float32)
    h1 = jnp.maximum(h1 + b1_ref[...], 0.0)
    # Layer 2: Linear + ReLU.  W2/b2 are zero-padded to 128 lanes, so the
    # padded columns stay exactly 0 after ReLU and contribute nothing later.
    h2 = jnp.dot(h1.astype(cdt), w2_ref[...], preferred_element_type=jnp.float32)
    h2 = jnp.maximum(h2 + b2_ref[...], 0.0)
    # Layer 3: Linear (no activation).  w3 rows are zero-padded 64->128 to
    # match h2; columns are left at action_dim so the output block (and its
    # HBM writeback) is only action_dim lanes wide.
    out = jnp.dot(h2.astype(cdt), w3_ref[...], preferred_element_type=jnp.float32)
    o_ref[...] = (out + b3_ref[...]).astype(o_ref.dtype)


@functools.partial(jax.jit, static_argnames=("block_b", "compute_dtype"))
def qnet_forward(x, params, *, block_b=DEFAULT_BLOCK_B,
                 compute_dtype=jnp.float32):
    """x: (B, state_dim) f32.  params: dict of w1,b1,w2,b2,w3,b3 (in,out layout).

    compute_dtype: dtype of the MXU operands (f32 or bf16); accumulation and
    the returned Q-values are always f32.
    """
    B, state_dim = x.shape
    action_dim = params["w3"].shape[1]
    cdt = jnp.dtype(compute_dtype)

    # --- weight prep (once, outside the grid): lane-pad the narrow hidden
    #     layer, keep the output width at action_dim, cast operands to cdt. ---
    w1 = params["w1"].astype(cdt)                                  # (S, 128)
    b1 = params["b1"].astype(jnp.float32)                          # (1, 128)
    w2 = _pad_to(params["w2"], (HIDDEN1, LANE)).astype(cdt)        # (128, 128)
    b2 = _pad_to(params["b2"], (1, LANE)).astype(jnp.float32)      # (1, 128)
    w3 = _pad_to(params["w3"], (LANE, action_dim)).astype(cdt)     # (128, A)
    b3 = params["b3"].astype(jnp.float32)                          # (1, A)

    # --- batch tiling: tile divides the batch when possible (no pad/slice
    #     passes); >= MIN_GRID_STEPS steps so both TCs + the pipeline engage. ---
    tb = _choose_tile(B, block_b)
    b_pad = _round_up(B, tb)
    if b_pad != B:
        x = jnp.pad(x, ((0, b_pad - B), (0, 0)))
    grid = (b_pad // tb,)

    # x / out tiles stream over the batch; weights & biases stay VMEM-resident
    # (constant block index -> Pallas skips the re-DMA each step).
    in_specs = [
        pl.BlockSpec((tb, state_dim), lambda i: (i, 0)),       # x (streamed)
        pl.BlockSpec((state_dim, HIDDEN1), lambda i: (0, 0)),  # w1
        pl.BlockSpec((1, HIDDEN1), lambda i: (0, 0)),          # b1
        pl.BlockSpec((HIDDEN1, LANE), lambda i: (0, 0)),       # w2 (padded)
        pl.BlockSpec((1, LANE), lambda i: (0, 0)),             # b2 (padded)
        pl.BlockSpec((LANE, action_dim), lambda i: (0, 0)),    # w3 (row-padded)
        pl.BlockSpec((1, action_dim), lambda i: (0, 0)),       # b3
    ]
    out_specs = pl.BlockSpec((tb, action_dim), lambda i: (i, 0))

    out = pl.pallas_call(
        qnet_kernel,
        out_shape=jax.ShapeDtypeStruct((b_pad, action_dim), jnp.float32),
        grid=grid,
        in_specs=in_specs,
        out_specs=out_specs,
        compiler_params=pltpu.CompilerParams(
            dimension_semantics=("parallel",),
            vmem_limit_bytes=32 * 1024 * 1024,
        ),
    )(x, w1, b1, w2, b2, w3, b3)

    # Only slice when the batch had to be padded (usually it does not).
    if b_pad != B:
        out = out[:B]
    return out


def init_qnet_params(key, state_dim, action_dim):
    """PyTorch Linear default init (U[-1/sqrt(fan_in), 1/sqrt(fan_in)]).
    Weights stored as (in, out); biases as (1, out)."""
    def linear(k, fan_in, fan_out):
        kw, kb = jax.random.split(k)
        bound = 1.0 / jnp.sqrt(float(fan_in))
        w = jax.random.uniform(kw, (fan_in, fan_out), jnp.float32, -bound, bound)
        b = jax.random.uniform(kb, (1, fan_out), jnp.float32, -bound, bound)
        return w, b

    k1, k2, k3 = jax.random.split(key, 3)
    w1, b1 = linear(k1, state_dim, HIDDEN1)
    w2, b2 = linear(k2, HIDDEN1, HIDDEN2)
    w3, b3 = linear(k3, HIDDEN2, action_dim)
    return {"w1": w1, "b1": b1, "w2": w2, "b2": b2, "w3": w3, "b3": b3}


def qnet_reference(x, p):
    h1 = jnp.maximum(x @ p["w1"] + p["b1"], 0.0)
    h2 = jnp.maximum(h1 @ p["w2"] + p["b2"], 0.0)
    return h2 @ p["w3"] + p["b3"]


if __name__ == "__main__":
    key = jax.random.PRNGKey(0)
    k_params, k_x = jax.random.split(key)

    batch, state_dim, action_dim = 32, 16, 6   # Taxi-v3: 6 actions
    params = init_qnet_params(k_params, state_dim, action_dim)
    x = jax.random.normal(k_x, (batch, state_dim), jnp.float32)

    ref = qnet_reference(x, params)

    # f32-operand path (default): tight tolerance vs. the pure-JAX reference.
    out = jax.block_until_ready(qnet_forward(x, params))
    assert out.shape == (batch, action_dim), out.shape
    assert jnp.allclose(out, ref, atol=1e-5, rtol=1e-5)

    # bf16-operand path (f32 accumulation): looser tolerance, still f32 output.
    out_bf16 = jax.block_until_ready(
        qnet_forward(x, params, compute_dtype=jnp.bfloat16))
    assert out_bf16.shape == (batch, action_dim), out_bf16.shape
    assert jnp.allclose(out_bf16, ref, atol=5e-2, rtol=5e-2)

    print("KERNEL_OK")
</pallas_src>

<mosaic_0001>
module attributes {stable_mosaic.version = 11 : i64} {
  func.func @qnet_kernel(%arg0: i32, %arg1: memref<8x16xf32, #tpu.memory_space<vmem>>, %arg2: memref<16x128xf32, #tpu.memory_space<vmem>>, %arg3: memref<1x128xf32, #tpu.memory_space<vmem>>, %arg4: memref<128x128xf32, #tpu.memory_space<vmem>>, %arg5: memref<1x128xf32, #tpu.memory_space<vmem>>, %arg6: memref<128x6xf32, #tpu.memory_space<vmem>>, %arg7: memref<1x6xf32, #tpu.memory_space<vmem>>, %arg8: memref<8x6xf32, #tpu.memory_space<vmem>>) attributes {dimension_semantics = [#tpu.dimension_semantics<parallel>], iteration_bounds = array<i64: 4>, scalar_prefetch = 0 : i64, scratch_operands = 0 : i64, tpu.core_type = #tpu.core_type<tc>, window_params = [{transform_indices = @transform_0, window_bounds = array<i64: 8, 16>}, {pipeline_mode = #tpu.pipeline_mode<synchronous>, transform_indices = @transform_1, window_bounds = array<i64: 16, 128>}, {pipeline_mode = #tpu.pipeline_mode<synchronous>, transform_indices = @transform_2, window_bounds = array<i64: 1, 128>}, {pipeline_mode = #tpu.pipeline_mode<synchronous>, transform_indices = @transform_3, window_bounds = array<i64: 128, 128>}, {pipeline_mode = #tpu.pipeline_mode<synchronous>, transform_indices = @transform_4, window_bounds = array<i64: 1, 128>}, {pipeline_mode = #tpu.pipeline_mode<synchronous>, transform_indices = @transform_5, window_bounds = array<i64: 128, 6>}, {pipeline_mode = #tpu.pipeline_mode<synchronous>, transform_indices = @transform_6, window_bounds = array<i64: 1, 6>}, {transform_indices = @transform_7, window_bounds = array<i64: 8, 6>}]} {
    %c0 = arith.constant 0 : index
    %c0_0 = arith.constant 0 : index
    %0 = vector.load %arg1[%c0, %c0_0] : memref<8x16xf32, #tpu.memory_space<vmem>>, vector<8x16xf32>
    %c0_1 = arith.constant 0 : index
    %c0_2 = arith.constant 0 : index
    %1 = vector.load %arg2[%c0_1, %c0_2] : memref<16x128xf32, #tpu.memory_space<vmem>>, vector<16x128xf32>
    %cst = arith.constant dense<0.000000e+00> : vector<8x128xf32>
    %2 = tpu.matmul %0, %1, %cst {dimension_numbers = #tpu.dot_dimension_numbers<[1], [0], [0], [1], [0, 0, 1, 1], [], []>} : vector<8x16xf32>, vector<16x128xf32>, vector<8x128xf32> -> vector<8x128xf32>
    %c0_3 = arith.constant 0 : index
    %c0_4 = arith.constant 0 : index
    %3 = vector.load %arg3[%c0_3, %c0_4] : memref<1x128xf32, #tpu.memory_space<vmem>>, vector<1x128xf32>
    %4 = vector.broadcast %3 : vector<1x128xf32> to vector<8x128xf32>
    %5 = arith.addf %2, %4 : vector<8x128xf32>
    %cst_5 = arith.constant 0.000000e+00 : f32
    %6 = vector.broadcast %cst_5 : f32 to vector<8x128xf32>
    %7 = arith.maximumf %5, %6 : vector<8x128xf32>
    %c0_6 = arith.constant 0 : index
    %c0_7 = arith.constant 0 : index
    %8 = vector.load %arg4[%c0_6, %c0_7] : memref<128x128xf32, #tpu.memory_space<vmem>>, vector<128x128xf32>
    %cst_8 = arith.constant dense<0.000000e+00> : vector<8x128xf32>
    %9 = tpu.matmul %7, %8, %cst_8 {dimension_numbers = #tpu.dot_dimension_numbers<[1], [0], [0], [1], [0, 0, 1, 1], [], []>} : vector<8x128xf32>, vector<128x128xf32>, vector<8x128xf32> -> vector<8x128xf32>
    %c0_9 = arith.constant 0 : index
    %c0_10 = arith.constant 0 : index
    %10 = vector.load %arg5[%c0_9, %c0_10] : memref<1x128xf32, #tpu.memory_space<vmem>>, vector<1x128xf32>
    %11 = vector.broadcast %10 : vector<1x128xf32> to vector<8x128xf32>
    %12 = arith.addf %9, %11 : vector<8x128xf32>
    %cst_11 = arith.constant 0.000000e+00 : f32
    %13 = vector.broadcast %cst_11 : f32 to vector<8x128xf32>
    %14 = arith.maximumf %12, %13 : vector<8x128xf32>
    %c0_12 = arith.constant 0 : index
    %c0_13 = arith.constant 0 : index
    %15 = vector.load %arg6[%c0_12, %c0_13] : memref<128x6xf32, #tpu.memory_space<vmem>>, vector<128x6xf32>
    %cst_14 = arith.constant dense<0.000000e+00> : vector<8x6xf32>
    %16 = tpu.matmul %14, %15, %cst_14 {dimension_numbers = #tpu.dot_dimension_numbers<[1], [0], [0], [1], [0, 0, 1, 1], [], []>} : vector<8x128xf32>, vector<128x6xf32>, vector<8x6xf32> -> vector<8x6xf32>
    %c0_15 = arith.constant 0 : index
    %c0_16 = arith.constant 0 : index
    %17 = vector.load %arg7[%c0_15, %c0_16] : memref<1x6xf32, #tpu.memory_space<vmem>>, vector<1x6xf32>
    %18 = vector.broadcast %17 : vector<1x6xf32> to vector<8x6xf32>
    %19 = arith.addf %16, %18 : vector<8x6xf32>
    %c0_17 = arith.constant 0 : index
    %c0_18 = arith.constant 0 : index
    %20 = vector.load %arg8[%c0_17, %c0_18] : memref<8x6xf32, #tpu.memory_space<vmem>>, vector<8x6xf32>
    tpu.vector_store %arg8[%c0_17, %c0_18], %19 {strides = array<i32>} : memref<8x6xf32, #tpu.memory_space<vmem>>, vector<8x6xf32>,
    return
  }
  func.func @transform_0(%arg0: i32) -> (i32, i32) {
    %c0_i32 = arith.constant 0 : i32
    %c0_i32_0 = arith.constant 0 : i32
    return %arg0, %c0_i32 : i32, i32
  }
  func.func @transform_1(%arg0: i32) -> (i32, i32) {
    %c0_i32 = arith.constant 0 : i32
    %c0_i32_0 = arith.constant 0 : i32
    %c0_i32_1 = arith.constant 0 : i32
    return %c0_i32, %c0_i32_0 : i32, i32
  }
  func.func @transform_2(%arg0: i32) -> (i32, i32) {
    %c0_i32 = arith.constant 0 : i32
    %c0_i32_0 = arith.constant 0 : i32
    %c0_i32_1 = arith.constant 0 : i32
    return %c0_i32, %c0_i32_0 : i32, i32
  }
  func.func @transform_3(%arg0: i32) -> (i32, i32) {
    %c0_i32 = arith.constant 0 : i32
    %c0_i32_0 = arith.constant 0 : i32
    %c0_i32_1 = arith.constant 0 : i32
    return %c0_i32, %c0_i32_0 : i32, i32
  }
  func.func @transform_4(%arg0: i32) -> (i32, i32) {
    %c0_i32 = arith.constant 0 : i32
    %c0_i32_0 = arith.constant 0 : i32
    %c0_i32_1 = arith.constant 0 : i32
    return %c0_i32, %c0_i32_0 : i32, i32
  }
  func.func @transform_5(%arg0: i32) -> (i32, i32) {
    %c0_i32 = arith.constant 0 : i32
    %c0_i32_0 = arith.constant 0 : i32
    %c0_i32_1 = arith.constant 0 : i32
    return %c0_i32, %c0_i32_0 : i32, i32
  }
  func.func @transform_6(%arg0: i32) -> (i32, i32) {
    %c0_i32 = arith.constant 0 : i32
    %c0_i32_0 = arith.constant 0 : i32
    %c0_i32_1 = arith.constant 0 : i32
    return %c0_i32, %c0_i32_0 : i32, i32
  }
  func.func @transform_7(%arg0: i32) -> (i32, i32) {
    %c0_i32 = arith.constant 0 : i32
    %c0_i32_0 = arith.constant 0 : i32
    return %arg0, %c0_i32 : i32, i32
  }
}

</mosaic_0001>

<bundles_post_ra>
// kernel: qnet_forward.1
= control target key start
LH: loop header
LB: loop body
LE: loop exit
PB: predicated region body
PF: predicated region fallthrough
CT: control target
= control target key end

     0   :  { %s841_s24 = smov 0   ;;  %s996_s0 = inlined_call_operand.vmem [shape: f32[32,16], index: 0, kind: input, shape index: {}]   ;;  %s997_s1 = inlined_call_operand.vmem [shape: f32[16,128], index: 1, kind: input, shape index: {}]   ;;  %s998_s2 = inlined_call_operand.vmem [shape: f32[1,128], index: 2, kind: input, shape index: {}]   ;;  %s999_s3 = inlined_call_operand.vmem [shape: f32[128,128], index: 3, kind: input, shape index: {}]   ;;  %s1000_s4 = inlined_call_operand.vmem [shape: f32[1,128], index: 4, kind: input, shape index: {}]   ;;  %s1001_s5 = inlined_call_operand.vmem [shape: f32[128,6], index: 5, kind: input, shape index: {}]   ;;  %s1002_s6 = inlined_call_operand.vmem [shape: f32[1,6], index: 6, kind: input, shape index: {}]   ;;  %s1003_s7 = inlined_call_operand.vmem [shape: f32[32,6], index: 7, kind: output, shape index: {}]  }
   0x1 LB: > { %s601_s25 = sadd.s32 4294967295, %s796_s24   ;;  %p605_p0 = scmp.ge.s32.totalorder %s796_s24, 1  ;;  %s796_s24 = sphi %s841_s24, %s17_s24  }
   0x2   : > { %p236_p1 = scmp.lt.s32.totalorder %s796_s24, 5 }
   0x4   : > { %p237_p2 = pnand %p605_p0, %p236_p1 }
   0x5   : > { %v275_v0 = vld [vmem:[%s997_s1] sm:$0xff] (!%p237_p2)  ;;  %v276_v1 = vld [vmem:[%s997_s1 + $0x8] sm:$0xff] (!%p237_p2)  ;;  %p266_p3 = scmp.lt.s32.totalorder (!%p237_p2), %s601_s25, 3  ;;  %v798_v2 = vmov (!%p237_p2), 0.0|0.0   ;;  %vm799_vm0 = vmmov (!%p237_p2), 0   ;;  %v800_v4 = vmov (!%p237_p2), 0.0  }
   0x6   : > { %240 = sbr.rel (%p237_p2) target bundleno = 664 (0x298), region = 48  ;;  %728 = vmatprep.subr.bf16.mxu0 (!%p237_p2), %v798_v2  ;;  %v729_v3 = vpack.c.bf16 (!%p237_p2), %v276_v1, %v275_v0  ;;  %655 = vmatprep.mubr.msk.f32.mxu0 (!%p237_p2), %vm799_vm0, %v800_v4  ;;  %v359_v5 = vld [vmem:[%s999_s3] sm:$0xff] (!%p237_p2)  ;;  %v360_v6 = vld [vmem:[%s999_s3 + $0x8] sm:$0xff] (!%p237_p2)  ;;  %v361_v7 = vld [vmem:[%s999_s3 + $0x10] sm:$0xff] (!%p237_p2)  ;;  %vm284_vm1 = vcmask (!%p237_p2), 130048   ;;  %vm546_vm2 = vcmask (!%p237_p2), 48128  }
   0x7   : > { %731 = vmatprep.subr.bf16.mxu1 (!%p237_p2), %v798_v2  ;;  %v732_v8 = vpack.c.bf16 (!%p237_p2), %v360_v6, %v359_v5  ;;  %v362_v9 = vld [vmem:[%s999_s3 + $0x18] sm:$0xff] (!%p237_p2)  ;;  %690 = vmatprep.mubr.msk.f32.mxu1 (!%p237_p2), %vm799_vm0, %v800_v4  ;;  %v363_v11 = vld [vmem:[%s999_s3 + $0x20] sm:$0xff] (!%p237_p2)  ;;  %v364_v12 = vld [vmem:[%s999_s3 + $0x28] sm:$0xff] (!%p237_p2) }
   0x8   : > { %730 = vmatpush3.bf16.msra.mxu0 (!%p237_p2), %v729_v3  ;;  %v735_v10 = vpack.c.bf16 (!%p237_p2), %v362_v9, %v361_v7  ;;  %v738_v14 = vpack.c.bf16 (!%p237_p2), %v364_v12, %v363_v11  ;;  %v365_v15 = vld [vmem:[%s999_s3 + $0x30] sm:$0xff] (!%p237_p2)  ;;  %v366_v16 = vld [vmem:[%s999_s3 + $0x38] sm:$0xff] (!%p237_p2)  ;;  %v367_v18 = vld [vmem:[%s999_s3 + $0x40] sm:$0xff] (!%p237_p2) }
   0x9   : > { %733 = vmatpush3.bf16.msra.mxu1 (!%p237_p2), %v732_v8  ;;  %755 = vmatprep.subr.bf16.mxu0 (!%p237_p2), %v798_v2  ;;  %v741_v17 = vpack.c.bf16 (!%p237_p2), %v366_v16, %v365_v15  ;;  %v368_v19 = vld [vmem:[%s999_s3 + $0x48] sm:$0xff] (!%p237_p2)  ;;  %v369_v21 = vld [vmem:[%s999_s3 + $0x50] sm:$0xff] (!%p237_p2)  ;;  %v370_v22 = vld [vmem:[%s999_s3 + $0x58] sm:$0xff] (!%p237_p2) }
   0xa   : > { %734 = vmatprep.subr.bf16.mxu1 (!%p237_p2), %v798_v2  ;;  %v744_v20 = vpack.c.bf16 (!%p237_p2), %v368_v19, %v367_v18  ;;  %v747_v23 = vpack.c.bf16 (!%p237_p2), %v370_v22, %v369_v21  ;;  %v371_v24 = vld [vmem:[%s999_s3 + $0x60] sm:$0xff] (!%p237_p2)  ;;  %v372_v25 = vld [vmem:[%s999_s3 + $0x68] sm:$0xff] (!%p237_p2)  ;;  %v373_v27 = vld [vmem:[%s999_s3 + $0x70] sm:$0xff] (!%p237_p2) }
   0xb   : > { %v750_v26 = vpack.c.bf16 (!%p237_p2), %v372_v25, %v371_v24  ;;  %v374_v28 = vld [vmem:[%s999_s3 + $0x78] sm:$0xff] (!%p237_p2)  ;;  %v453_v30 = vld [vmem:[%s1001_s5] sm:$0xff] (!%p237_p2)  ;;  %v454_v31 = vld [vmem:[%s1001_s5 + $0x8] sm:$0xff] (!%p237_p2) }
   0xc   : > { %v753_v29 = vpack.c.bf16 (!%p237_p2), %v374_v28, %v373_v27  ;;  %v455_v32 = vld [vmem:[%s1001_s5 + $0x10] sm:$0xff] (!%p237_p2)  ;;  %v756_v33 = vpack.c.bf16 (!%p237_p2), %v454_v31, %v453_v30  ;;  %v456_v34 = vld [vmem:[%s1001_s5 + $0x18] sm:$0xff] (!%p237_p2)  ;;  %v457_v36 = vld [vmem:[%s1001_s5 + $0x20] sm:$0xff] (!%p237_p2) }
   0xd   : > { %s1005_s25 = smov (!%p266_p3, %s601_s25), 3  ;;  %736 = vmatpush3.bf16.msra.mxu1 %v735_v10  ;;  %v759_v35 = vpack.c.bf16 %v456_v34, %v455_v32  ;;  %v458_v37 = vld [vmem:[%s1001_s5 + $0x28] sm:$0xff]  ;;  %v459_v39 = vld [vmem:[%s1001_s5 + $0x30] sm:$0xff]  ;;  %v460_v40 = vld [vmem:[%s1001_s5 + $0x38] sm:$0xff] }
   0xe   : > { %s606_s15 = sshll.u32 %s1005_s25, 3  ;;  %737 = vmatprep.subr.bf16.mxu1 %v798_v2  ;;  %v762_v38 = vpack.c.bf16 %v458_v37, %v457_v36  ;;  %v765_v41 = vpack.c.bf16 %v460_v40, %v459_v39  ;;  %v461_v42 = vld [vmem:[%s1001_s5 + $0x40] sm:$0xff]  ;;  %v462_v43 = vld [vmem:[%s1001_s5 + $0x48] sm:$0xff]  ;;  %v463_v45 = vld [vmem:[%s1001_s5 + $0x50] sm:$0xff] }
   0xf   : > { %s269_s18 = scalar_lea.vmem %s996_s0, %s606_s15  ;;  %v768_v44 = vpack.c.bf16 %v462_v43, %v461_v42  ;;  %v464_v46 = vld [vmem:[%s1001_s5 + $0x58] sm:$0xff]  ;;  %v465_v48 = vld [vmem:[%s1001_s5 + $0x60] sm:$0xff]  ;;  %v466_v49 = vld [vmem:[%s1001_s5 + $0x68] sm:$0xff]  ;;  %s273_s23 = scalar_lea.vmem %s1003_s7, %s606_s15 }
  0x10   : > { %v274_v13 = vld [vmem:[%s269_s18] sm:$0xff]  ;;  %v771_v47 = vpack.c.bf16 %v464_v46, %v463_v45  ;;  %v774_v50 = vpack.c.bf16 %v466_v49, %v465_v48  ;;  %v467_v56 = vld [vmem:[%s1001_s5 + $0x70] sm:$0xff]  ;;  %v468_v57 = vld [vmem:[%s1001_s5 + $0x78] sm:$0xff] }
  0x11   : > { %656 = vmatmul.mubr.msk.f32.vlgmr.msra.gmra.mrb[0].mxu0 %vm284_vm1, %v274_v13  ;;  %739 = vmatpush3.bf16.msra.mxu1 %v738_v14  ;;  %v608_v51 = vld [vmem:[%s998_s2] ss:$0 sm:$0xff]  ;;  %v777_v58 = vpack.c.bf16 %v468_v57, %v467_v56 }
  0x12   : > { %725 = vmatprep.mubr.msk.f32.mxu0 %vm799_vm0, %v800_v4  ;;  %740 = vmatprep.subr.bf16.mxu1 %v798_v2  ;;  %v610_v59 = vld [vmem:[%s1000_s4] ss:$0 sm:$0xff] }
  0x13   : > { %757 = vmatpush3.bf16.msra.mxu0 %v756_v33  ;;  %v611_v0 = vld [vmem:[%s1002_s6] ss:$0 sm:$0xff] }
  0x14   : > { %758 = vmatprep.subr.bf16.mxu0 %v798_v2 }
  0x15   : > { %742 = vmatpush3.bf16.msra.mxu1 %v741_v17 }
  0x16   : > { %743 = vmatprep.subr.bf16.mxu1 %v798_v2 }
  0x17   : > { %760 = vmatpush3.bf16.msra.mxu0 %v759_v35 }
  0x18   : > { %761 = vmatprep.subr.bf16.mxu0 %v798_v2 }
  0x19   : > { %745 = vmatpush3.bf16.msra.mxu1 %v744_v20 }
  0x1a   : > { %746 = vmatprep.subr.bf16.mxu1 %v798_v2 }
  0x1b   : > { %763 = vmatpush3.bf16.msra.mxu0 %v762_v38 }
  0x1c   : > { %764 = vmatprep.subr.bf16.mxu0 %v798_v2 }
  0x1d   : > { %748 = vmatpush3.bf16.msra.mxu1 %v747_v23 }
  0x1e   : > { %749 = vmatprep.subr.bf16.mxu1 %v798_v2 }
  0x1f   : > { %766 = vmatpush3.bf16.msra.mxu0 %v765_v41 }
  0x20   : > { %767 = vmatprep.subr.bf16.mxu0 %v798_v2 }
  0x21   : > { %751 = vmatpush3.bf16.msra.mxu1 %v750_v26 }
  0x22   : > { %752 = vmatprep.subr.bf16.mxu1 %v798_v2 }
  0x23   : > { %769 = vmatpush3.bf16.msra.mxu0 %v768_v44 }
  0x24   : > { %770 = vmatprep.subr.bf16.mxu0 %v798_v2 }
  0x25   : > { %754 = vmatpush3.bf16.msra.mxu1 %v753_v29 }
  0x27   : > { %772 = vmatpush3.bf16.msra.mxu0 %v771_v47 }
  0x28   : > { %773 = vmatprep.subr.bf16.mxu0 %v798_v2 }
  0x2b   : > { %775 = vmatpush3.bf16.msra.mxu0 %v774_v50 }
  0x2c   : > { %776 = vmatprep.subr.bf16.mxu0 %v798_v2 }
  0x2f   : > { %778 = vmatpush3.bf16.msra.mxu0 %v777_v58 }
  0xe4   : > { %v354_v52 = vpop.f32.mrb[0].mxu0 }
  0xe5   : > { %v355_v53 = vadd.f32 %v608_v51, %v354_v52  ;;  %v657_v54 = vpop.f32.mrb[1].mxu0 }
  0xe7   : > { %v358_v55 = vmax.f32 %v355_v53, 0.0 }
  0xe9   : > { %691 = vmatmul.mubr.f32.vlgmr.msra.gmra.mrb[0].mxu1 %v358_v55 }
 0x1bc   : > { %v448_v60 = vpop.f32.mrb[0].mxu1 }
 0x1bd   : > { %v449_v61 = vadd.f32 %v610_v59, %v448_v60  ;;  %v692_v62 = vpop.f32.mrb[1].mxu1 }
 0x1bf   : > { %v452_v63 = vmax.f32 %v449_v61, 0.0 }
 0x1c1   : > { %726 = vmatmul.mubr.f32.vlgmr.msra.gmra.mrb[2].mxu0 %v452_v63 }
 0x294   : > { %v542_v1 = vpop.f32.mrb[2].mxu0 }
 0x295   : > { %v543_v2 = vadd.f32 %v611_v0, %v542_v1  ;;  %v727_v3 = vpop.f32.mrb[3].mxu0 }
 0x297   : > { %547 = vst.msk [vmem:[%s273_s23] sm:$0xff] %vm546_vm2, %v543_v2 }
 0x298 PF: > { %s17_s24 = sadd.s32 1, %s796_s24  }
 0x299   : > { %p14_p4 = scmp.ge.s32.totalorder %s17_s24, 6  }
 0x29b   :  { %16 = sbr.rel (!%p14_p4) target bundleno = 1 (0x1), region = 78 }

</bundles_post_ra>
